<compile_context>
chip_gen: v7x
topology: tpu7x:2x2x1
jax: 0.10.0
libtpu: 0.0.40
codegen_flags: <defaults>
</compile_context>

<pallas_src>
import functools

import jax
import jax.numpy as jnp
from jax.experimental import pallas as pl
from jax.experimental.pallas import tpu as pltpu

EPS = 1e-5      # BatchNorm eps (PyTorch default)
SLOPE = 0.2     # LeakyReLU negative_slope
_TILE_N = 64    # point-tile size (raise towards 256 for large N)


def _pick_tile(total, target=_TILE_N, mult=8):
    """Largest tile <= target that divides `total` and is a multiple of `mult`."""
    t = min(total, target)
    t -= t % mult
    if t <= 0:
        return total
    while total % t:
        t -= mult
        if t <= 0:
            return total
    return t


# --------------------------- pairwise distances -----------------------------

def _pairwise_kernel(xr_ref, xa_ref, sq_ref, o_ref):
    """Negative squared pairwise distances for one (batch, row-tile) block.

    xr_ref: (1, TN, C) query rows, xa_ref: (1, N, C) all points,
    sq_ref: (1, 1, N) precomputed ||x_j||^2, o_ref: (1, TN, N).
    pd[i, j] = 2 x_i.x_j - ||x_i||^2 - ||x_j||^2   (larger == closer)
    """
    xr = xr_ref[0]                                                    # (TN, C)
    xa = xa_ref[0]                                                    # (N, C)
    inner = jax.lax.dot_general(xr, xa, (((1,), (1,)), ((), ())),
                                preferred_element_type=jnp.float32)   # (TN, N)
    sq_r = jnp.sum(xr * xr, axis=1, keepdims=True)                    # (TN, 1)
    o_ref[0] = 2.0 * inner - sq_r - sq_ref[0]


def pairwise_neg_sqdist(x_cl):
    """x_cl: [B, N, C] -> [B, N, N], row-tiled output blocks."""
    B, N, C = x_cl.shape
    tn = _pick_tile(N)
    sqn = jnp.sum(x_cl * x_cl, axis=-1)[:, None, :]                   # [B, 1, N] (tiny)
    return pl.pallas_call(
        _pairwise_kernel,
        grid=(B, N // tn),
        in_specs=[pl.BlockSpec((1, tn, C), lambda b, t: (b, t, 0)),
                  pl.BlockSpec((1, N, C), lambda b, t: (b, 0, 0)),
                  pl.BlockSpec((1, 1, N), lambda b, t: (b, 0, 0))],
        out_specs=pl.BlockSpec((1, tn, N), lambda b, t: (b, t, 0)),
        out_shape=jax.ShapeDtypeStruct((B, N, N), jnp.float32),
        compiler_params=pltpu.CompilerParams(
            dimension_semantics=("parallel", "parallel")),
    )(x_cl, x_cl, sqn)


# ------------------- fused graph-feature edge-conv (2 passes) ---------------

def _edge_stats_kernel(*refs, npairs, k_nn):
    """Pass 1: fused graph-feature build + 1x1 conv, per-point max/min over K of the
    raw conv output, plus running per-channel sum / sum-of-squares (BN statistics)."""
    in_refs = refs[:4 * npairs]
    max_ref, min_ref, sum_ref, ssq_ref = refs[4 * npairs:]

    # Center contribution, computed once per point and shared by all K neighbors.
    yc = None
    for p in range(npairs):
        center = in_refs[4 * p + 1][0]                                # (tn, Cp)
        wadj = in_refs[4 * p + 3][...]                                # (Cp, Cout)
        c = jnp.dot(center, wadj, preferred_element_type=jnp.float32)
        yc = c if yc is None else yc + c

    m = mn = s = sq = None
    for kk in range(k_nn):                                            # static unroll
        y = yc
        for p in range(npairs):
            nk = in_refs[4 * p][0, kk]                                # (tn, Cp)
            wa = in_refs[4 * p + 2][...]                              # (Cp, Cout)
            y = y + jnp.dot(nk, wa, preferred_element_type=jnp.float32)
        if kk == 0:
            m, mn, s, sq = y, y, y, y * y
        else:
            m = jnp.maximum(m, y)
            mn = jnp.minimum(mn, y)
            s = s + y
            sq = sq + y * y

    max_ref[0] = m
    min_ref[0] = mn

    @pl.when(jnp.logical_and(pl.program_id(0) == 0, pl.program_id(1) == 0))
    def _():
        sum_ref[...] = jnp.zeros_like(sum_ref)
        ssq_ref[...] = jnp.zeros_like(ssq_ref)

    sum_ref[...] += jnp.sum(s, axis=0, keepdims=True)
    ssq_ref[...] += jnp.sum(sq, axis=0, keepdims=True)


def _edge_finalize_kernel(max_ref, min_ref, sum_ref, ssq_ref, g_ref, b_ref, o_ref,
                          *, count, eps, slope):
    """Pass 2 (K x smaller): fold train-mode BN into one scale/shift, pick max or min
    over K by sign(scale) (exact: affine + LeakyReLU are monotone), apply LeakyReLU."""
    inv = 1.0 / count
    mean = sum_ref[...] * inv                                         # (1, Cout)
    var = jnp.maximum(ssq_ref[...] * inv - mean * mean, 0.0)
    scale = g_ref[...] * jax.lax.rsqrt(var + eps)
    shift = b_ref[...] - mean * scale
    y = jnp.where(scale >= 0.0, max_ref[0], min_ref[0])               # (tn, Cout)
    y = y * scale + shift
    o_ref[0] = jnp.maximum(y, slope * y)                              # LeakyReLU


def edge_conv_fused(pairs, w, gamma, beta):
    """Fused graph-feature + 1x1 conv + train-mode BN + LeakyReLU + max over K.

    pairs: list of (neigh, center): neigh [B, K, N, Cp] (K-leading gather), center
           [B, N, Cp]; the torch graph feature is concat_p([neigh_p - center_p, center_p]).
    w: [sum_p 2*Cp, Cout] in torch channel order; gamma/beta: [Cout].
    Returns [B, N, Cout].
    """
    B, K, N, _ = pairs[0][0].shape
    Cout = w.shape[1]
    tn = _pick_tile(N)
    grid = (B, N // tn)

    inputs, in_specs = [], []
    row = 0
    for neigh, center in pairs:
        Cp = neigh.shape[-1]
        wa = w[row:row + Cp]
        wadj = w[row + Cp:row + 2 * Cp] - wa
        row += 2 * Cp
        inputs += [neigh, center, wa, wadj]
        in_specs += [
            pl.BlockSpec((1, K, tn, Cp), lambda b, t: (b, 0, t, 0)),
            pl.BlockSpec((1, tn, Cp), lambda b, t: (b, t, 0)),
            pl.BlockSpec((Cp, Cout), lambda b, t: (0, 0)),
            pl.BlockSpec((Cp, Cout), lambda b, t: (0, 0)),
        ]

    maxo, mino, ssum, ssq = pl.pallas_call(
        functools.partial(_edge_stats_kernel, npairs=len(pairs), k_nn=K),
        grid=grid,
        in_specs=in_specs,
        out_specs=[pl.BlockSpec((1, tn, Cout), lambda b, t: (b, t, 0)),
                   pl.BlockSpec((1, tn, Cout), lambda b, t: (b, t, 0)),
                   pl.BlockSpec((1, Cout), lambda b, t: (0, 0)),
                   pl.BlockSpec((1, Cout), lambda b, t: (0, 0))],
        out_shape=[jax.ShapeDtypeStruct((B, N, Cout), jnp.float32),
                   jax.ShapeDtypeStruct((B, N, Cout), jnp.float32),
                   jax.ShapeDtypeStruct((1, Cout), jnp.float32),
                   jax.ShapeDtypeStruct((1, Cout), jnp.float32)],
        compiler_params=pltpu.CompilerParams(          # BN accumulator spans the grid
            dimension_semantics=("arbitrary", "arbitrary")),
    )(*inputs)

    return pl.pallas_call(
        functools.partial(_edge_finalize_kernel,
                          count=float(B * N * K), eps=EPS, slope=SLOPE),
        grid=grid,
        in_specs=[pl.BlockSpec((1, tn, Cout), lambda b, t: (b, t, 0)),
                  pl.BlockSpec((1, tn, Cout), lambda b, t: (b, t, 0)),
                  pl.BlockSpec((1, Cout), lambda b, t: (0, 0)),
                  pl.BlockSpec((1, Cout), lambda b, t: (0, 0)),
                  pl.BlockSpec((1, Cout), lambda b, t: (0, 0)),
                  pl.BlockSpec((1, Cout), lambda b, t: (0, 0))],
        out_specs=pl.BlockSpec((1, tn, Cout), lambda b, t: (b, t, 0)),
        out_shape=jax.ShapeDtypeStruct((B, N, Cout), jnp.float32),
        compiler_params=pltpu.CompilerParams(
            dimension_semantics=("parallel", "parallel")),
    )(maxo, mino, ssum, ssq, gamma.reshape(1, Cout), beta.reshape(1, Cout))


# --------------------------------- head -------------------------------------

def _head_kernel(x_ref, w1_ref, b1_ref, w2_ref, b2_ref, w3_ref, b3_ref, out_ref, *, slope):
    """mean over axis 1 + three Linear layers, each followed by LeakyReLU."""
    def lrelu(v):
        return jnp.maximum(v, slope * v)
    x = jnp.mean(x_ref[...], axis=1)                                  # (B, 64)
    h = lrelu(jnp.dot(x, w1_ref[...], preferred_element_type=jnp.float32) + b1_ref[...])
    h = lrelu(jnp.dot(h, w2_ref[...], preferred_element_type=jnp.float32) + b2_ref[...])
    h = lrelu(jnp.dot(h, w3_ref[...], preferred_element_type=jnp.float32) + b3_ref[...])
    out_ref[...] = h


def head(x_view, p):
    """x_view: [B, M, 64] -> [B, 11].  Tiny; single block."""
    B, M, D = x_view.shape
    return pl.pallas_call(
        functools.partial(_head_kernel, slope=SLOPE),
        grid=(1,),
        in_specs=[pl.BlockSpec((B, M, D), lambda i: (0, 0, 0)),
                  pl.BlockSpec((64, 64), lambda i: (0, 0)),
                  pl.BlockSpec((1, 64), lambda i: (0, 0)),
                  pl.BlockSpec((64, 32), lambda i: (0, 0)),
                  pl.BlockSpec((1, 32), lambda i: (0, 0)),
                  pl.BlockSpec((32, 11), lambda i: (0, 0)),
                  pl.BlockSpec((1, 11), lambda i: (0, 0))],
        out_specs=pl.BlockSpec((B, 11), lambda i: (0, 0)),
        out_shape=jax.ShapeDtypeStruct((B, 11), jnp.float32),
    )(x_view,
      p['lw1'], p['lb1'].reshape(1, 64),
      p['lw2'], p['lb2'].reshape(1, 32),
      p['lw3'], p['lb3'].reshape(1, 11))


# ------------------------------- JAX glue ------------------------------------

def knn_idx(x_cl, k):
    """x_cl: [B, N, C] -> knn indices [B, N, K]."""
    pd = pairwise_neg_sqdist(x_cl)
    # TODO(synk): streaming in-kernel top-k would avoid the [B,N,N] HBM round trip at
    # large N; the data-dependent selection stays in XLA for now.
    return jax.lax.top_k(pd, k)[1]


def gather_neighbors_kf(x_cl, idx):
    """x_cl: [B, N, C], idx: [B, N, K] -> K-leading gathered neighbors [B, K, N, C]."""
    idx_kf = jnp.transpose(idx, (0, 2, 1))                            # tiny int transpose
    # TODO(synk): fuse this data-dependent gather into the edge-conv kernel
    # (scalar-prefetch idx + in-kernel gather / DMA) to remove one HBM round trip.
    return jax.vmap(lambda xb, ib: xb[ib])(x_cl, idx_kf)              # [B, K, N, C]


def _merged_stage2_params(p):
    """conv2 (Cin=38->32) and conv_down_1 (Cin=32->32) read the same graph features, so
    they run as ONE Cout=64 fused edge-conv (wd1 zero-padded over the x1_gf rows)."""
    w_m = jnp.concatenate(
        [p['w2'],
         jnp.concatenate([jnp.zeros((6, 32), jnp.float32), p['wd1']], axis=0)],
        axis=1)                                                       # (38, 64)
    g_m = jnp.concatenate([p['g2'], p['gd1']])
    b_m = jnp.concatenate([p['b2'], p['bd1']])
    return w_m, g_m, b_m


def init_params(key):
    ks = jax.random.split(key, 10)

    def w(kk, shape):
        return jax.random.normal(kk, shape, jnp.float32) * 0.1

    return {
        # 1x1 conv weights stored as [Cin, Cout]; BN gamma/beta at PyTorch init.
        'w1': w(ks[0], (6, 16)),   'g1': jnp.ones((16,), jnp.float32), 'b1': jnp.zeros((16,), jnp.float32),
        'w2': w(ks[1], (38, 32)),  'g2': jnp.ones((32,), jnp.float32), 'b2': jnp.zeros((32,), jnp.float32),
        'wd1': w(ks[2], (32, 32)), 'gd1': jnp.ones((32,), jnp.float32), 'bd1': jnp.zeros((32,), jnp.float32),
        'wd2': w(ks[3], (64, 32)), 'gd2': jnp.ones((32,), jnp.float32), 'bd2': jnp.zeros((32,), jnp.float32),
        'lw1': w(ks[4], (64, 64)), 'lb1': w(ks[5], (64,)),
        'lw2': w(ks[6], (64, 32)), 'lb2': w(ks[7], (32,)),
        'lw3': w(ks[8], (32, 11)), 'lb3': w(ks[9], (11,)),
    }


@functools.partial(jax.jit, static_argnames='k')
def forward(x_in, params, k=20):
    # torch: x.squeeze(0).permute(1, 0, 2)  ->  [B, 3, N]
    x = jnp.transpose(jnp.squeeze(x_in, 0), (1, 0, 2))
    B, _, N = x.shape
    x_cl = jnp.transpose(x, (0, 2, 1))                                # [B, N, 3]

    # --- stage 1 ---
    idx1 = knn_idx(x_cl, k)
    neigh1 = gather_neighbors_kf(x_cl, idx1)                          # [B, K, N, 3]
    x1_max = edge_conv_fused([(neigh1, x_cl)],
                             params['w1'], params['g1'], params['b1'])    # [B, N, 16]

    # --- stage 2 + down-branch 1 (merged: identical graph features) ---
    idx2 = knn_idx(x1_max, k)
    neigh2 = gather_neighbors_kf(x1_max, idx2)                        # [B, K, N, 16]
    w_m, g_m, b_m = _merged_stage2_params(params)
    y2 = edge_conv_fused([(neigh1, x_cl), (neigh2, x1_max)], w_m, g_m, b_m)   # [B, N, 64]
    x2_max = y2[..., :32]                                             # conv2 branch
    x_down_1 = y2[..., 32:]                                           # conv_down_1 branch

    # --- down-branch 2 ---
    idx3 = knn_idx(x2_max, k)
    neigh3 = gather_neighbors_kf(x2_max, idx3)                        # [B, K, N, 32]
    x_down_2 = edge_conv_fused([(neigh3, x2_max)],
                               params['wd2'], params['gd2'], params['bd2'])   # [B, N, 32]

    # torch: cat along channel dim (channels-first) then .view(B, -1, 64)
    cat_cf = jnp.concatenate([jnp.transpose(x_down_1, (0, 2, 1)),
                              jnp.transpose(x_down_2, (0, 2, 1))], axis=1)    # [B, 64, N]
    x_view = cat_cf.reshape(B, -1, 64)   # exact row-major .view semantics
    return head(x_view, params)                                       # [B, 11]


# -------------------- plain-JAX reference (for self-check) -------------------

def _ref_edge_conv(pairs, w, gamma, beta):
    """Faithful reference: concat graph feature -> matmul -> train BN -> LeakyReLU -> max."""
    feats = []
    for neigh, center in pairs:                     # neigh [B,K,N,C], center [B,N,C]
        c = jnp.broadcast_to(center[:, None, :, :], neigh.shape)
        feats += [neigh - c, c]
    f = jnp.concatenate(feats, axis=-1)             # [B, K, N, Cin]
    y = jnp.einsum('bknc,cd->bknd', f, w)
    mean = jnp.mean(y, axis=(0, 1, 2), keepdims=True)
    var = jnp.mean((y - mean) ** 2, axis=(0, 1, 2), keepdims=True)
    yn = (y - mean) * jax.lax.rsqrt(var + EPS) * gamma + beta
    yn = jnp.where(yn >= 0, yn, SLOPE * yn)
    return jnp.max(yn, axis=1)                      # [B, N, Cout]


if __name__ == "__main__":
    key = jax.random.PRNGKey(0)
    k_in, k_par = jax.random.split(key)

    # torch input layout: [1, C=3, batch, num_points]
    B, N, K = 2, 128, 20
    x_in = jax.random.normal(k_in, (1, 3, B, N), jnp.float32)
    params = init_params(k_par)

    # --- light correctness checks of the Pallas kernels vs plain-JAX references ---
    x_cl = jnp.transpose(x_in[0], (1, 2, 0))                          # [B, N, 3]

    pd = pairwise_neg_sqdist(x_cl)
    diff = x_cl[:, :, None, :] - x_cl[:, None, :, :]
    assert jnp.allclose(pd, -jnp.sum(diff * diff, axis=-1), rtol=1e-3, atol=1e-3)

    idx1 = knn_idx(x_cl, K)
    neigh1 = gather_neighbors_kf(x_cl, idx1)
    x1_max = edge_conv_fused([(neigh1, x_cl)], params['w1'], params['g1'], params['b1'])
    x1_ref = _ref_edge_conv([(neigh1, x_cl)], params['w1'], params['g1'], params['b1'])
    assert jnp.allclose(x1_max, x1_ref, rtol=2e-3, atol=2e-3)

    idx2 = knn_idx(x1_max, K)
    neigh2 = gather_neighbors_kf(x1_max, idx2)
    w_m, g_m, b_m = _merged_stage2_params(params)
    y2 = edge_conv_fused([(neigh1, x_cl), (neigh2, x1_max)], w_m, g_m, b_m)
    ref_a = _ref_edge_conv([(neigh1, x_cl), (neigh2, x1_max)],
                           params['w2'], params['g2'], params['b2'])
    ref_b = _ref_edge_conv([(neigh2, x1_max)], params['wd1'], params['gd1'], params['bd1'])
    assert jnp.allclose(y2[..., :32], ref_a, rtol=2e-3, atol=2e-3)
    assert jnp.allclose(y2[..., 32:], ref_b, rtol=2e-3, atol=2e-3)

    # --- full forward pass ---
    out = forward(x_in, params, k=K)
    out = jax.block_until_ready(out)
    assert out.shape == (B, 11) and out.dtype == jnp.float32
    assert bool(jnp.all(jnp.isfinite(out)))
    print("KERNEL_OK")
</pallas_src>

<mosaic_0001>
module attributes {stable_mosaic.version = 11 : i64} {
  func.func @_pairwise_kernel(%arg0: i32, %arg1: i32, %arg2: memref<1x64x3xf32, #tpu.memory_space<vmem>>, %arg3: memref<1x128x3xf32, #tpu.memory_space<vmem>>, %arg4: memref<1x1x128xf32, #tpu.memory_space<vmem>>, %arg5: memref<1x64x128xf32, #tpu.memory_space<vmem>>) attributes {dimension_semantics = [#tpu.dimension_semantics<parallel>, #tpu.dimension_semantics<parallel>], iteration_bounds = array<i64: 2, 2>, scalar_prefetch = 0 : i64, scratch_operands = 0 : i64, tpu.core_type = #tpu.core_type<tc>, window_params = [{transform_indices = @transform_0, window_bounds = array<i64: 1, 64, 3>}, {transform_indices = @transform_1, window_bounds = array<i64: 1, 128, 3>}, {transform_indices = @transform_2, window_bounds = array<i64: 1, 1, 128>}, {transform_indices = @transform_3, window_bounds = array<i64: 1, 64, 128>}]} {
    %c0 = arith.constant 0 : index
    %c0_0 = arith.constant 0 : index
    %c0_1 = arith.constant 0 : index
    %0 = vector.load %arg2[%c0, %c0_0, %c0_1] : memref<1x64x3xf32, #tpu.memory_space<vmem>>, vector<1x64x3xf32>
    %1 = vector.shape_cast %0 : vector<1x64x3xf32> to vector<64x3xf32>
    %c0_2 = arith.constant 0 : index
    %c0_3 = arith.constant 0 : index
    %c0_4 = arith.constant 0 : index
    %2 = vector.load %arg3[%c0_2, %c0_3, %c0_4] : memref<1x128x3xf32, #tpu.memory_space<vmem>>, vector<1x128x3xf32>
    %3 = vector.shape_cast %2 : vector<1x128x3xf32> to vector<128x3xf32>
    %cst = arith.constant dense<0.000000e+00> : vector<64x128xf32>
    %4 = tpu.matmul %1, %3, %cst {dimension_numbers = #tpu.dot_dimension_numbers<[1], [1], [0], [0], [0, 0, 1, 0], [], []>} : vector<64x3xf32>, vector<128x3xf32>, vector<64x128xf32> -> vector<64x128xf32>
    %5 = arith.mulf %1, %1 : vector<64x3xf32>
    %cst_5 = arith.constant dense<0.000000e+00> : vector<64xf32>
    %6 = vector.multi_reduction <add>, %5, %cst_5 [1] : vector<64x3xf32> to vector<64xf32>
    %7 = vector.shape_cast %6 : vector<64xf32> to vector<64x1xf32>
    %cst_6 = arith.constant 2.000000e+00 : f32
    %8 = vector.broadcast %cst_6 : f32 to vector<64x128xf32>
    %9 = arith.mulf %8, %4 : vector<64x128xf32>
    %10 = vector.broadcast %7 : vector<64x1xf32> to vector<64x128xf32>
    %11 = arith.subf %9, %10 : vector<64x128xf32>
    %c0_7 = arith.constant 0 : index
    %c0_8 = arith.constant 0 : index
    %c0_9 = arith.constant 0 : index
    %12 = vector.load %arg4[%c0_7, %c0_8, %c0_9] : memref<1x1x128xf32, #tpu.memory_space<vmem>>, vector<1x1x128xf32>
    %13 = vector.shape_cast %12 : vector<1x1x128xf32> to vector<1x128xf32>
    %14 = vector.broadcast %13 : vector<1x128xf32> to vector<64x128xf32>
    %15 = arith.subf %11, %14 : vector<64x128xf32>
    %c0_10 = arith.constant 0 : index
    %c0_11 = arith.constant 0 : index
    %c0_12 = arith.constant 0 : index
    %16 = vector.load %arg5[%c0_10, %c0_11, %c0_12] : memref<1x64x128xf32, #tpu.memory_space<vmem>>, vector<1x64x128xf32>
    %17 = vector.shape_cast %16 : vector<1x64x128xf32> to vector<64x128xf32>
    %18 = vector.shape_cast %15 : vector<64x128xf32> to vector<1x64x128xf32>
    tpu.vector_store %arg5[%c0_10, %c0_11, %c0_12], %18 {strides = array<i32>} : memref<1x64x128xf32, #tpu.memory_space<vmem>>, vector<1x64x128xf32>,
    return
  }
  func.func @transform_0(%arg0: i32, %arg1: i32) -> (i32, i32, i32) {
    %c0_i32 = arith.constant 0 : i32
    %c0_i32_0 = arith.constant 0 : i32
    return %arg0, %arg1, %c0_i32 : i32, i32, i32
  }
  func.func @transform_1(%arg0: i32, %arg1: i32) -> (i32, i32, i32) {
    %c0_i32 = arith.constant 0 : i32
    %c0_i32_0 = arith.constant 0 : i32
    %c0_i32_1 = arith.constant 0 : i32
    return %arg0, %c0_i32, %c0_i32_0 : i32, i32, i32
  }
  func.func @transform_2(%arg0: i32, %arg1: i32) -> (i32, i32, i32) {
    %c0_i32 = arith.constant 0 : i32
    %c0_i32_0 = arith.constant 0 : i32
    %c0_i32_1 = arith.constant 0 : i32
    return %arg0, %c0_i32, %c0_i32_0 : i32, i32, i32
  }
  func.func @transform_3(%arg0: i32, %arg1: i32) -> (i32, i32, i32) {
    %c0_i32 = arith.constant 0 : i32
    %c0_i32_0 = arith.constant 0 : i32
    return %arg0, %arg1, %c0_i32 : i32, i32, i32
  }
}

</mosaic_0001>

<bundles_post_ra>
// kernel: tpu_custom_call.1
= control target key start
LH: loop header
LB: loop body
LE: loop exit
PB: predicated region body
PF: predicated region fallthrough
CT: control target
= control target key end

     0   :  { %8 = vsyncpa [#allocation3], 0  ;;  %s1283_s0 = inlined_call_operand.vmem [shape: f32[2,128,3], index: 0, kind: input, shape index: {}]   ;;  %s1284_s1 = inlined_call_operand.vmem [shape: f32[2,128,3], index: 1, kind: input, shape index: {}]   ;;  %s1285_s2 = inlined_call_operand.vmem [shape: f32[2,1,128], index: 2, kind: input, shape index: {}]   ;;  %s1286_s3 = inlined_call_operand.hbm [shape: f32[2,128,128], index: 3, kind: output, shape index: {}]  }
   0x1   :  { %10 = vsyncpa [#allocation3 + $0x1], 0  ;;  %s993_s12 = smov 0   ;;  %s995_s13 = smov 0  }
   0x2   :  { %s997_s14 = smov 0   ;;  %s999_s15 = smov 0  }
   0x3   :  { %s1001_s16 = smov 0   ;;  %s1003_s17 = smov 0  }
   0x4   :  { %s1005_s18 = smov 0   ;;  %s1007_s19 = smov 0  }
   0x5 LB: > { %s626_s20 = sadd.s32 4294967295, %s968_s19   ;;  %s627_s21 = sadd.s32 4294967294, %s968_s19   ;;  %s968_s19 = sphi %s1007_s19, %s16_s19   ;;  %s964_s18 = sphi %s1005_s18, %s1297_s18   ;;  %s960_s17 = sphi %s1003_s17, %s1296_s17   ;;  %s956_s16 = sphi %s1001_s16, %s1295_s16   ;;  %s952_s15 = sphi %s999_s15, %s1294_s15   ;;  %s948_s14 = sphi %s997_s14, %s1293_s14   ;;  %s944_s13 = sphi %s995_s13, %s1292_s13   ;;  %s940_s12 = sphi %s993_s12, %s1291_s12  }
   0x6   : > { %s25_s22 = sadd.s32 1, %s960_s17  ;;  %s28_s23 = sadd.s32 1, %s964_s18 }
   0x7   : > { %p26_p0 = scmp.ge.s32.totalorder %s25_s22, 2  ;;  %p127_p1 = scmp.ne.s32.totalorder %s948_s14, %s944_s13 }
   0x8   : > { %p128_p2 = scmp.eq.s32.totalorder %s626_s20, 3  ;;  %p133_p5 = scmp.ne.s32.totalorder %s944_s13, %s940_s12 }
   0x9   : > { %s1299_s22 = smov (%p26_p0, %s25_s22), 0  ;;  %s1301_s23 = smov (!%p26_p0, %s28_s23), %s964_s18 }
   0xa   : > { %s113_s24 = ssub.s32 %s960_s17, %s1299_s22  ;;  %p1044_p3 = por %p128_p2, %p127_p1 }
   0xb   : > { %p30_p4 = scmp.ge.s32.totalorder %s1301_s23, 2  ;;  %p134_p6 = scmp.eq.s32.totalorder %s627_s21, 3 }
   0xc   : > { %p630_p7 = scmp.ge.s32.totalorder %s968_s19, 1  ;;  %p179_p9 = scmp.lt.s32.totalorder %s968_s19, 5 }
   0xd   : > { %s1303_s23 = smov (%p30_p4, %s1301_s23), 0  ;;  %p1053_p8 = por %p134_p6, %p133_p5 }
   0xe   : > { %s112_s27 = ssub.s32 %s964_s18, %s1303_s23  ;;  %s117_s28 = sadd.s32 1, %s948_s14 }
   0xf   : > { %s114_s29 = sor.u32 %s113_s24, %s112_s27  ;;  %p180_p10 = pnand %p630_p7, %p179_p9 }
  0x10   : > { %p115_p11 = scmp.eq.s32.totalorder %s114_s29, 0  ;;  %p216_p12 = scmp.lt.s32.totalorder (!%p180_p10), %s956_s16, 1  ;;  %vm258_vm0 = vcmask (!%p180_p10), 23552  }
  0x11   : > { %183 = sbr.rel (%p180_p10) target bundleno = 333 (0x14d), region = 32  ;;  %s1066_s4 = sshll.u32 (!%p180_p10), %s952_s15, 3  ;;  %vm1082_vm1 = vmpackc.low (!%p180_p10), %vm258_vm0, %vm258_vm0 }
  0x12   : > { %s1062_s30 = scalar_select %p115_p11, %s948_s14, %s117_s28  }
  0x13   : > { %p218_p13 = scmp.lt.s32.totalorder (!%p180_p10), %s1066_s4, 15  ;;  %s212_s28 = sand.u32 (!%p180_p10), 1, %s944_s13  }
  0x14   : > { %s664_s29 = sshll.u32 (!%p180_p10), %s956_s16, 4  ;;  %s631_s9 = sshll.u32 (!%p180_p10), %s212_s28, 6 }
  0x15   : > { %s1219_s10 = sadd.s32 (!%p180_p10), %s664_s29, %s1066_s4  ;;  %s1231_s21 = scalar_lea.sflag (!%p180_p10), [#allocation3], %s212_s28 }
  0x18   : > { %s1070_s5 = scalar_select %p216_p12, %s956_s16, 1 }
  0x19   : > { %s219_s6 = scalar_select %p218_p13, %s1066_s4, 15 }
  0x1a   : > { %s668_s7 = sshll.u32 %s1070_s5, 7  ;;  %s633_s8 = sshll.u32 %s1070_s5, 4 }
  0x1b   : > { %s1078_s11 = scalar_lea.vmem %s1284_s1, %s668_s7  ;;  %s221_s15 = sadd.s32 %s633_s8, %s219_s6 }
  0x1c   : > { %v242_v1 = vld [vmem:[%s1078_s11] sm:$0xff]  ;;  %v243_v2 = vld [vmem:[%s1078_s11 + $0x8] sm:$0xff]  ;;  %v244_v3 = vld [vmem:[%s1078_s11 + $0x10] sm:$0xff]  ;;  %s634_s20 = sshll.u32 %s221_s15, 3  ;;  %s232_s8 = scalar_lea.vmem %s1285_s2, %s1070_s5 }
  0x1d   : > { %v737_v4 = vpack.c.bf16 %v243_v2, %v242_v1  ;;  %v245_v5 = vld [vmem:[%s1078_s11 + $0x18] sm:$0xff]  ;;  %s1093_s27 = scalar_lea.vmem %s1283_s0, %s634_s20  ;;  %v246_v7 = vld [vmem:[%s1078_s11 + $0x20] sm:$0xff]  ;;  %v247_v10 = vld [vmem:[%s1078_s11 + $0x28] sm:$0xff]  ;;  %s665_s16 = sshll.u32 %s1219_s10, 7 }
  0x1e   : > { %v743_v6 = vpack.c.bf16 %v245_v5, %v244_v3  ;;  %v234_v8 = vld [vmem:[%s1093_s27] sm:$0xff]  ;;  %v1114_v12 = vld [vmem:[%s1093_s27 + $0x8] sm:$0xff]  ;;  %v1117_v13 = vld [vmem:[%s1093_s27 + $0x10] sm:$0xff]  ;;  %v749_v19 = vpack.c.bf16 %v247_v10, %v246_v7  ;;  %s214_s4 = scalar_lea.vmem [#allocation2], %s631_s9  ;;  %s1225_s20 = scalar_lea.hbm %s1286_s3, %s665_s16 }
  0x1f   : > { %739 = vmatprep.subr.msk.bf16.mxu0 %vm1082_vm1, %v737_v4  ;;  %785 = vmatprep.subr.msk.bf16.mxu1 %vm1082_vm1, %v737_v4  ;;  %v238_v9 = vld [vmem:[%s1093_s27 + $0x20] sm:$0xff]  ;;  %v436_v11 = vmul.f32 %v234_v8, %v234_v8  ;;  %v1120_v14 = vld [vmem:[%s1093_s27 + $0x18] sm:$0xff]  ;;  %v438_v15 = vmul.f32 %v1117_v13, %v1117_v13  ;;  %v437_v16 = vmul.f32 %v1114_v12, %v1114_v12  ;;  %v239_v21 = vld [vmem:[%s1093_s27 + $0x28] sm:$0xff]  ;;  %s523_s5 = sshll.u32 %s214_s4, 4  ;;  %s1227_s5 = int_to_ptr.vmem [resolvable:$true] %s523_s5 }
  0x20   : > { %742 = vmatpush3.bf16.xpose.msk.msra.mxu0 %vm1082_vm1, %v737_v4  ;;  %793 = vmatpush3.bf16.xpose.msk.msra.mxu1 %vm1082_vm1, %v737_v4  ;;  %v439_v18 = vmul.f32 %v1120_v14, %v1120_v14  ;;  %v440_v22 = vmul.f32 %v238_v9, %v238_v9  ;;  %v441_v25 = vmul.f32 %v239_v21, %v239_v21  ;;  %v248_v26 = vld [vmem:[%s1078_s11 + $0x30] sm:$0xff]  ;;  %v249_v27 = vld [vmem:[%s1078_s11 + $0x38] sm:$0xff]  ;;  %v250_v37 = vld [vmem:[%s1078_s11 + $0x40] sm:$0xff]  ;;  %s874_s24 = scalar_lea.vmem %s1227_s5, 1024 }
  0x21   : > { %745 = vmatprep.subr.msk.bf16.mxu0 %vm1082_vm1, %v743_v6  ;;  %786 = vmatprep.subr.msk.bf16.mxu1 %vm1082_vm1, %v743_v6  ;;  %v444_v17 = vsel %vm258_vm0, %v436_v11, 0.0  ;;  %v450_v20 = vsel %vm258_vm0, %v438_v15, 0.0  ;;  %v447_v24 = vsel %vm258_vm0, %v437_v16, 0.0  ;;  %v240_v28 = vld [vmem:[%s1093_s27 + $0x30] sm:$0xff]  ;;  %v241_v29 = vld [vmem:[%s1093_s27 + $0x38] sm:$0xff]  ;;  %v755_v34 = vpack.c.bf16 %v249_v27, %v248_v26  ;;  %v251_v38 = vld [vmem:[%s1078_s11 + $0x48] sm:$0xff]  ;;  %p875_p0 = scmp.ne.s32.totalorder %s1227_s5, %s874_s24 }
  0x22   : > { %725 = vmatprep.mubr.msk.f32.mxu0 %vm258_vm0, %v234_v8  ;;  %731 = vmatprep.mubr.msk.f32.mxu1 %vm258_vm0, %v238_v9  ;;  %v453_v23 = vsel %vm258_vm0, %v439_v18, 0.0  ;;  %v459_v30 = vsel %vm258_vm0, %v441_v25, 0.0  ;;  %v456_v31 = vsel %vm258_vm0, %v440_v22, 0.0  ;;  %v443_v32 = vmul.f32 %v241_v29, %v241_v29  ;;  %v252_v40 = vld [vmem:[%s1078_s11 + $0x50] sm:$0xff]  ;;  %v253_v41 = vld [vmem:[%s1078_s11 + $0x58] sm:$0xff]  ;;  %v254_v43 = vld [vmem:[%s1078_s11 + $0x60] sm:$0xff] }
  0x23   : > { %445 = vadd.xlane.f32.xlu0 %v444_v17  ;;  %451 = vadd.xlane.f32.xlu1 %v450_v20  ;;  %v442_v33 = vmul.f32 %v240_v28, %v240_v28  ;;  %v761_v39 = vpack.c.bf16 %v251_v38, %v250_v37  ;;  %v767_v42 = vpack.c.bf16 %v253_v41, %v252_v40  ;;  %v255_v44 = vld [vmem:[%s1078_s11 + $0x68] sm:$0xff]  ;;  %v256_v46 = vld [vmem:[%s1078_s11 + $0x70] sm:$0xff]  ;;  %v257_v47 = vld [vmem:[%s1078_s11 + $0x78] sm:$0xff]  ;;  %p876_p1 = pnand %p875_p0, %p1044_p3  ;;  %s970_s27 = smov [#allocation2]  }
  0x24   : > { %v465_v35 = vsel %vm258_vm0, %v443_v32, 0.0  ;;  %v773_v45 = vpack.c.bf16 %v255_v44, %v254_v43  ;;  %v779_v48 = vpack.c.bf16 %v257_v47, %v256_v46  ;;  %v661_v61 = vld [vmem:[%s232_s8] ss:$0 sm:$0xff]  ;;  %s878_s29 = sshll.u32 %s970_s27, 4  ;;  %s879_s29 = int_to_ptr.vmem [resolvable:$false] %s878_s29 }
  0x25   : > { %v462_v36 = vsel %vm258_vm0, %v442_v33, 0.0  ;;  %p877_p2 = pneg %p876_p1  ;;  %s880_s6 = scalar_lea.vmem %s879_s29, 2048 }
  0x26   : > { %p881_p4 = scmp.lt.s32.totalorder %s1227_s5, %s879_s29  ;;  %p882_p5 = scmp.lt.s32.totalorder %s880_s6, %s874_s24 }
  0x27   : > { %454 = vadd.xlane.f32.xlu1 %v453_v23  ;;  %448 = vadd.xlane.f32.xlu0 %v447_v24 }
  0x28   : > { %748 = vmatpush3.bf16.xpose.msk.msra.mxu0 %vm1082_vm1, %v743_v6  ;;  %794 = vmatpush3.bf16.xpose.msk.msra.mxu1 %vm1082_vm1, %v743_v6  ;;  %p883_p6 = por %p882_p5, %p881_p4 }
  0x29   : > { %751 = vmatprep.subr.msk.bf16.mxu0 %vm1082_vm1, %v749_v19  ;;  %787 = vmatprep.subr.msk.bf16.mxu1 %vm1082_vm1, %v749_v19 }
  0x2a   : > { %p884_p7 = pnand %p883_p6, %p877_p2 }
  0x2b   : > { %460 = vadd.xlane.f32.xlu1 %v459_v30  ;;  %457 = vadd.xlane.f32.xlu0 %v456_v31 }
  0x2f   : > { %466 = vadd.xlane.f32.xlu1 %v465_v35  ;;  %463 = vadd.xlane.f32.xlu0 %v462_v36 }
  0x30   : > { %754 = vmatpush3.bf16.xpose.msk.msra.mxu0 %vm1082_vm1, %v749_v19  ;;  %795 = vmatpush3.bf16.xpose.msk.msra.mxu1 %vm1082_vm1, %v749_v19 }
  0x31   : > { %757 = vmatprep.subr.msk.bf16.mxu0 %vm1082_vm1, %v755_v34  ;;  %788 = vmatprep.subr.msk.bf16.mxu1 %vm1082_vm1, %v755_v34 }
  0x38   : > { %760 = vmatpush3.bf16.xpose.msk.msra.mxu0 %vm1082_vm1, %v755_v34  ;;  %796 = vmatpush3.bf16.xpose.msk.msra.mxu1 %vm1082_vm1, %v755_v34 }
  0x39   : > { %763 = vmatprep.subr.msk.bf16.mxu0 %vm1082_vm1, %v761_v39  ;;  %789 = vmatprep.subr.msk.bf16.mxu1 %vm1082_vm1, %v761_v39 }
  0x40   : > { %766 = vmatpush3.bf16.xpose.msk.msra.mxu0 %vm1082_vm1, %v761_v39  ;;  %797 = vmatpush3.bf16.xpose.msk.msra.mxu1 %vm1082_vm1, %v761_v39 }
  0x41   : > { %769 = vmatprep.subr.msk.bf16.mxu0 %vm1082_vm1, %v767_v42  ;;  %790 = vmatprep.subr.msk.bf16.mxu1 %vm1082_vm1, %v767_v42 }
  0x48   : > { %772 = vmatpush3.bf16.xpose.msk.msra.mxu0 %vm1082_vm1, %v767_v42  ;;  %798 = vmatpush3.bf16.xpose.msk.msra.mxu1 %vm1082_vm1, %v767_v42 }
  0x49   : > { %775 = vmatprep.subr.msk.bf16.mxu0 %vm1082_vm1, %v773_v45  ;;  %791 = vmatprep.subr.msk.bf16.mxu1 %vm1082_vm1, %v773_v45 }
  0x50   : > { %778 = vmatpush3.bf16.xpose.msk.msra.mxu0 %vm1082_vm1, %v773_v45  ;;  %799 = vmatpush3.bf16.xpose.msk.msra.mxu1 %vm1082_vm1, %v773_v45 }
  0x51   : > { %781 = vmatprep.subr.msk.bf16.mxu0 %vm1082_vm1, %v779_v48  ;;  %792 = vmatprep.subr.msk.bf16.mxu1 %vm1082_vm1, %v779_v48 }
  0x58   : > { %784 = vmatpush3.bf16.xpose.msk.msra.mxu0 %vm1082_vm1, %v779_v48  ;;  %800 = vmatpush3.bf16.xpose.msk.msra.mxu1 %vm1082_vm1, %v779_v48 }
  0x5f   : > { %726 = vmatmul.mubr.msk.f32.vlgmr.msra.gmra.mrb[0].mxu0 %vm258_vm0, %v1114_v12  ;;  %732 = vmatmul.mubr.msk.f32.vlgmr.msra.gmra.mrb[0].mxu1 %vm258_vm0, %v239_v21 }
  0x60   : > { %728 = vmatprep.mubr.msk.f32.mxu0 %vm258_vm0, %v1117_v13  ;;  %734 = vmatprep.mubr.msk.f32.mxu1 %vm258_vm0, %v240_v28 }
  0x63   : > { %729 = vmatmul.mubr.msk.f32.gmra.mrb[2].mxu0 %vm258_vm0, %v1120_v14  ;;  %735 = vmatmul.mubr.msk.f32.gmra.mrb[2].mxu1 %vm258_vm0, %v241_v29 }
  0xb0   : > { %v452_v49 = vpop.xlane.xlu1 %451  ;;  %v446_v50 = vpop.xlane.xlu0 %445 }
  0xb4   : > { %v455_v51 = vpop.xlane.xlu1 %454  ;;  %v449_v52 = vpop.xlane.xlu0 %448 }
  0xb8   : > { %v461_v53 = vpop.xlane.xlu1 %460  ;;  %v458_v54 = vpop.xlane.xlu0 %457 }
  0xbc   : > { %v467_v2 = vpop.xlane.xlu1 %466  ;;  %v464_v3 = vpop.xlane.xlu0 %463 }
 0x132   : > { %v727_v55 = vpop.f32.mrb[0].mxu0  ;;  %v733_v56 = vpop.f32.mrb[0].mxu1 }
 0x133   : > { %v469_v57 = vmul.f32 2.0, %v727_v55  ;;  %v473_v58 = vmul.f32 2.0, %v733_v56  ;;  %v397_v59 = vpop.f32.mrb[1].mxu0  ;;  %v417_v60 = vpop.f32.mrb[1].mxu1 }
 0x134   : > { %v468_v62 = vmul.f32 2.0, %v397_v59  ;;  %v472_v63 = vmul.f32 2.0, %v417_v60 }
 0x135   : > { %v477_v0 = vsub.f32 %v469_v57, %v449_v52  ;;  %v481_v1 = vsub.f32 %v473_v58, %v461_v53 }
 0x136   : > { %v476_v4 = vsub.f32 %v468_v62, %v446_v50  ;;  %v480_v5 = vsub.f32 %v472_v63, %v458_v54  ;;  %v730_v6 = vpop.f32.mrb[2].mxu0  ;;  %v736_v7 = vpop.f32.mrb[2].mxu1 }
 0x137   : > { %v492_v8 = vsub.f32 %v477_v0, %v661_v61  ;;  %v496_v9 = vsub.f32 %v481_v1, %v661_v61  ;;  %v471_v10 = vmul.f32 2.0, %v730_v6  ;;  %v475_v11 = vmul.f32 2.0, %v736_v7  ;;  %v407_v12 = vpop.f32.mrb[3].mxu0  ;;  %v427_v13 = vpop.f32.mrb[3].mxu1 }
 0x138   : > { %v491_v14 = vsub.f32 %v476_v4, %v661_v61  ;;  %v495_v15 = vsub.f32 %v480_v5, %v661_v61  ;;  %v470_v16 = vmul.f32 2.0, %v407_v12  ;;  %v474_v17 = vmul.f32 2.0, %v427_v13 }
 0x139   : > { %500 = vst [vmem:[%s214_s4 + $0x8] sm:$0xff] %v492_v8  ;;  %504 = vst [vmem:[%s214_s4 + $0x28] sm:$0xff] %v496_v9  ;;  %v479_v18 = vsub.f32 %v471_v10, %v455_v51  ;;  %v483_v19 = vsub.f32 %v475_v11, %v467_v2 }
 0x13a   : > { %499 = vst [vmem:[%s214_s4] sm:$0xff] %v491_v14  ;;  %503 = vst [vmem:[%s214_s4 + $0x20] sm:$0xff] %v495_v15  ;;  %v478_v20 = vsub.f32 %v470_v16, %v452_v49  ;;  %v482_v21 = vsub.f32 %v474_v17, %v464_v3 }
 0x13b   : > { %v494_v22 = vsub.f32 %v479_v18, %v661_v61  ;;  %v498_v23 = vsub.f32 %v483_v19, %v661_v61 }
 0x13c   : > { %v493_v24 = vsub.f32 %v478_v20, %v661_v61  ;;  %v497_v25 = vsub.f32 %v482_v21, %v661_v61 }
 0x13d   : > { %502 = vst [vmem:[%s214_s4 + $0x18] sm:$0xff] %v494_v22  ;;  %506 = vst [vmem:[%s214_s4 + $0x38] sm:$0xff] %v498_v23 }
 0x13e   : > { %501 = vst [vmem:[%s214_s4 + $0x10] sm:$0xff] %v493_v24  ;;  %505 = vst [vmem:[%s214_s4 + $0x30] sm:$0xff] %v497_v25 }
 0x13f   : > { %887 = shalt.err (!%p884_p7)
}
 0x140   : > { %s888_s28 = scalar_lea.hbm %s1225_s20, 1024  ;;  %s892_s9 = scalar_lea.hbm %s1286_s3, 4096 }
 0x141   : > { %p889_p9 = scmp.ne.s32.totalorder %s1225_s20, %s888_s28  ;;  %p893_p12 = scmp.lt.u32.totalorder %s1225_s20, %s1286_s3 }
 0x142   : > { %p894_p13 = scmp.lt.u32.totalorder %s892_s9, %s888_s28  ;;  %p896_p1 = scmp.lt.u32.totalorder %s888_s28, %s1225_s20 }
 0x143   : > { %p890_p10 = pnand %p889_p9, %p1044_p3 }
 0x144   : > { %p895_p0 = por %p894_p13, %p893_p12 }
 0x145   : > { %p891_p11 = pneg %p890_p10 }
 0x146   : > { %p897_p2 = por %p896_p1, %p895_p0 }
 0x148   : > { %p898_p4 = pnand %p897_p2, %p891_p11 }
 0x14a   : > { %901 = shalt.err (!%p898_p4)
}
 0x14b   : > { %s971_s4 = smov 128   ;;  %s972_s11 = smov 8  }
 0x14c   : > { %801 = dma.vmem_to_hbm [thread:$0]  (%p1044_p3), %s1227_s5, 1024, %s1225_s20, %s1231_s21, %s971_s4, %s971_s4, %s972_s11  }
 0x14d PF: > { %p807_p5 = scmp.ge.s32.totalorder %s968_s19, 2  ;;  %s538_s15 = sand.u32 1, %s940_s12  }
 0x14e   : > { %s539_s24 = scalar_lea.sflag [#allocation3], %s538_s15 }
 0x14f   : > { %p804_p6 = pnand %p807_p5, %p1053_p8 }
 0x151   : > { %935 = dma.done.wait (!%p804_p6), %s539_s24, 1024  }
 0x152   : > { %937 = vsyncadd (!%p804_p6), %s539_s24, 4294966272  ;;  %s16_s19 = sadd.s32 1, %s968_s19   ;;  %s1291_s12 = smov %s944_s13 }
 0x153   : > { %p13_p7 = scmp.ge.s32.totalorder %s16_s19, 6   ;;  %s1292_s13 = smov %s948_s14 }
 0x154   : > { %s1293_s14 = smov %s1062_s30  ;;  %s1294_s15 = smov %s960_s17 }
 0x155   : > { %s1295_s16 = smov %s964_s18  ;;  %s1296_s17 = smov %s1299_s22 }
 0x156   : > { %s1297_s18 = smov %s1303_s23  ;;  %15 = sbr.rel (!%p13_p7) target bundleno = 5 (0x5), region = 73 }
 0x15d   :  { %544 = vsyncpa [#allocation3], 1 }
 0x15e   :  { %546 = vsyncpa [#allocation3 + $0x1], 1 }

</bundles_post_ra>
